<compile_context>
chip_gen: v6e
topology: v6e:2x2x1
jax: 0.10.0
libtpu: 0.0.40
codegen_flags: <defaults>
</compile_context>

<pallas_src>
import functools
import math

import jax
import jax.numpy as jnp
from jax.experimental import pallas as pl
from jax.experimental.pallas import tpu as pltpu


def _self_attention_kernel(x_ref, wqkv_ref, bqkv_ref, gamma_ref, o_ref, *,
                           D_pad, inv_sqrt_d, nonlinear, use_gamma,
                           matmul_dtype):
    Bb, N, L = x_ref.shape

    # ---- fused QKV projection: one (Bb*N, L) x (L, 2*D_pad+L) MXU matmul ----
    # Leading-dim merge (Bb, N, L) -> (Bb*N, L) is layout-trivial (lane dim
    # unchanged).  Weights were pre-cast to matmul_dtype in the wrapper, so
    # only x needs (at most) one cast here.
    x_rows = x_ref[...].reshape(Bb * N, L)
    if x_rows.dtype != matmul_dtype:
        x_rows = x_rows.astype(matmul_dtype)
    qkv = jnp.dot(x_rows, wqkv_ref[...],
                  preferred_element_type=jnp.float32)      # (Bb*N, 2*Dp+L) f32
    qkv = qkv + bqkv_ref[...]                              # f32 bias add

    # Lane-aligned slices (D_pad is a multiple of 128).
    q = qkv[:, :D_pad]
    k = qkv[:, D_pad:2 * D_pad]
    v = qkv[:, 2 * D_pad:]
    if nonlinear:
        q = jnp.tanh(q)
        k = jnp.tanh(k)

    q = q.reshape(Bb, N, D_pad)
    k = k.reshape(Bb, N, D_pad)
    v = v.reshape(Bb, N, L)

    # ---- scaled dot-product scores; contraction on last/lane dims (no k.T
    # materialization -- the transpose is absorbed by the MXU push). ----
    score = jnp.einsum("bnd,bmd->bnm",
                       q.astype(matmul_dtype), k.astype(matmul_dtype),
                       preferred_element_type=jnp.float32) * inv_sqrt_d

    # ---- numerically-stable softmax over the last axis (f32) ----
    m = jnp.max(score, axis=-1, keepdims=True)
    e = jnp.exp(score - m)
    a = e * pl.reciprocal(jnp.sum(e, axis=-1, keepdims=True), approx=True)

    # ---- attention-weighted values ----
    if N <= 16:
        # Depth-N MXU contraction at tiny N is almost all push/drain latency;
        # do it on the VPU as an unrolled broadcast-mul-add, all in f32.
        ctx = a[:, :, 0:1] * v[:, 0:1, :]
        for mm in range(1, N):
            ctx = ctx + a[:, :, mm:mm + 1] * v[:, mm:mm + 1, :]
    else:
        ctx = jnp.einsum("bnm,bml->bnl",
                         a.astype(matmul_dtype), v.astype(matmul_dtype),
                         preferred_element_type=jnp.float32)   # (Bb, N, L)

    if use_gamma:
        # Reload x from VMEM here (3 vld slots/cycle, ~free) instead of
        # keeping an f32 copy live across the matmuls / softmax.
        out = gamma_ref[0, 0] * ctx + x_ref[...].astype(jnp.float32)
    else:
        out = ctx
    o_ref[...] = out.astype(o_ref.dtype)


def _pick_batch_block(B, N, L, W, target_rows=256,
                      vmem_budget=24 * 1024 * 1024):
    """Smallest divisor of B whose step carries >= target_rows stacked rows
    (good MXU fill, and only then is a multi-step/megacore split worth the
    per-step overhead), subject to a rough per-step VMEM estimate.  If B*N is
    too small to ever reach target_rows, run a single grid step."""
    def vmem_bytes(bb):
        rows = bb * N
        io = 2 * 2 * rows * L * 4            # x + out blocks, double-buffered
        qkv = rows * W * 4                   # f32 projection result
        score = 2 * bb * N * N * 4           # score + exp
        ctx = rows * L * 4
        return io + qkv + score + ctx

    divisors = [d for d in range(1, B + 1) if B % d == 0]
    ok = [d for d in divisors if vmem_bytes(d) <= vmem_budget] or divisors[:1]
    for d in ok:
        if d * N >= target_rows:
            return d
    return ok[-1]            # not enough rows to fill the MXU: fewest steps


def self_attention_pallas(x, params, *, D, nonlinear=True, use_gamma=True,
                          batch_block=None, matmul_dtype=jnp.bfloat16):
    """x: (B, N, L).  params hold weights already stored as (in_dim, out_dim).

    matmul_dtype: bfloat16 (default) feeds the MXU at its native rate on
    v5e/v6e/v7x while all elementwise math stays f32; pass jnp.float32 for
    exact numerics.
    """
    B, N, L = x.shape

    # Lane-align the q/k slices: pad D up to a multiple of 128 with zero
    # weight/bias columns.  Zero columns give q_pad = k_pad = 0 (tanh(0)=0),
    # so q.k^T is unchanged, but every qkv slice now starts/stops on a vreg
    # lane boundary and the score contraction is full 128-deep.
    D_pad = max(128, -(-D // 128) * 128)
    pad = D_pad - D
    wq = jnp.pad(params["wq"], ((0, 0), (0, pad)))
    wk = jnp.pad(params["wk"], ((0, 0), (0, pad)))
    bq = jnp.pad(params["bq"], ((0, pad),))
    bk = jnp.pad(params["bk"], ((0, pad),))
    W = 2 * D_pad + L

    # Fused weight/bias, built once outside the kernel.  The weight is
    # pre-cast to the MXU dtype so the kernel never re-casts it and the
    # HBM->VMEM weight DMA is halved in bf16.
    wqkv = jnp.concatenate([wq, wk, params["wv"]], axis=1).astype(matmul_dtype)
    bqkv = jnp.concatenate([bq, bk, params["bv"]]).astype(jnp.float32)
    bqkv = bqkv.reshape(1, W)
    gamma = jnp.asarray(params.get("gamma", jnp.zeros((1,), jnp.float32)),
                        jnp.float32).reshape(1, 1)

    if batch_block is None:
        batch_block = _pick_batch_block(B, N, L, W)
    assert B % batch_block == 0, "batch_block must divide B"
    steps = B // batch_block

    kernel = functools.partial(
        _self_attention_kernel,
        D_pad=D_pad,
        inv_sqrt_d=1.0 / math.sqrt(D),       # scale uses the ORIGINAL D
        nonlinear=nonlinear,
        use_gamma=use_gamma,
        matmul_dtype=matmul_dtype,
    )

    return pl.pallas_call(
        kernel,
        out_shape=jax.ShapeDtypeStruct((B, N, L), x.dtype),
        grid_spec=pltpu.PrefetchScalarGridSpec(
            num_scalar_prefetch=0,
            grid=(steps,),
            in_specs=[
                pl.BlockSpec((batch_block, N, L), lambda b: (b, 0, 0)),  # x
                pl.BlockSpec((L, W), lambda b: (0, 0)),          # fused Wqkv
                pl.BlockSpec((1, W), lambda b: (0, 0)),          # fused bias
                pl.BlockSpec(memory_space=pltpu.MemorySpace.SMEM),  # gamma
            ],
            out_specs=pl.BlockSpec((batch_block, N, L), lambda b: (b, 0, 0)),
        ),
        compiler_params=pltpu.CompilerParams(
            dimension_semantics=("parallel",),
            # v5e's default scoped VMEM is only 16 MiB; raise it explicitly
            # (32 MiB is within the scoped budget on v5e/v6e/v7x).
            vmem_limit_bytes=32 * 1024 * 1024,
        ),
    )(x, wqkv, bqkv, gamma)


def _reference(x, params, *, D, nonlinear, use_gamma):
    q = x @ params["wq"] + params["bq"]
    k = x @ params["wk"] + params["bk"]
    if nonlinear:
        q, k = jnp.tanh(q), jnp.tanh(k)
    v = x @ params["wv"] + params["bv"]
    score = jnp.einsum("bnd,bmd->bnm", q, k) / math.sqrt(D)
    a = jax.nn.softmax(score, axis=-1)
    ctx = jnp.einsum("bnm,bml->bnl", a, v)
    return params["gamma"][0] * ctx + x if use_gamma else ctx


if __name__ == "__main__":
    # Small, module-consistent shapes: B=2 bags, N=8 instances per bag,
    # L=128 instance features (typical MIL embedding width; keeps the output
    # store lane-dense), D=64 attention dim.
    B, N, L, D = 2, 8, 128, 64
    NONLINEAR = True     # config_params['selfatt-nonlinear']
    USE_GAMMA = True     # config_params['selfatt-gamma']

    key = jax.random.PRNGKey(0)
    kx, kwq, kbq, kwk, kbk, kwv, kbv = jax.random.split(key, 7)

    x = jax.random.normal(kx, (B, N, L), dtype=jnp.float32)

    def lin_init(kw, kb, fan_in, fan_out):
        # deterministic uniform init in the PyTorch Linear range (+/- 1/sqrt(fan_in))
        bound = 1.0 / math.sqrt(fan_in)
        w = jax.random.uniform(kw, (fan_in, fan_out), jnp.float32, -bound, bound)
        b = jax.random.uniform(kb, (fan_out,), jnp.float32, -bound, bound)
        return w, b

    wq, bq = lin_init(kwq, kbq, L, D)
    wk, bk = lin_init(kwk, kbk, L, D)
    wv, bv = lin_init(kwv, kbv, L, L)
    # nn.Parameter(torch.zeros(1)) in the original; use a nonzero value so the
    # gamma branch is actually exercised numerically.
    gamma = jnp.array([0.5], dtype=jnp.float32)

    params = dict(wq=wq, bq=bq, wk=wk, bk=bk, wv=wv, bv=bv, gamma=gamma)
    ref = _reference(x, params, D=D, nonlinear=NONLINEAR, use_gamma=USE_GAMMA)

    # Default (perf) configuration: bf16 MXU inputs, f32 elementwise.
    out_bf16 = self_attention_pallas(x, params, D=D,
                                     nonlinear=NONLINEAR, use_gamma=USE_GAMMA)
    out_bf16 = jax.block_until_ready(out_bf16)
    assert out_bf16.shape == (B, N, L)
    # bf16 MXU inputs + approx-reciprocal softmax: ~1e-2-level agreement.
    assert jnp.allclose(out_bf16, ref, atol=2e-2, rtol=2e-2), \
        "bf16 kernel mismatch vs JAX reference"

    # Exact-numerics configuration (f32 MXU inputs) as a tight check.
    out_f32 = self_attention_pallas(x, params, D=D,
                                    nonlinear=NONLINEAR, use_gamma=USE_GAMMA,
                                    matmul_dtype=jnp.float32)
    out_f32 = jax.block_until_ready(out_f32)
    # approx=True softmax reciprocal loosens exactness slightly (~1e-3 rel).
    assert jnp.allclose(out_f32, ref, atol=5e-3, rtol=5e-3), \
        "f32 kernel mismatch vs JAX reference"

    print("KERNEL_OK")
</pallas_src>

<mosaic_0001>
module attributes {stable_mosaic.version = 11 : i64} {
  func.func @_self_attention_kernel(%arg0: i32, %arg1: memref<2x8x128xf32, #tpu.memory_space<vmem>>, %arg2: memref<128x384xbf16, #tpu.memory_space<vmem>>, %arg3: memref<1x384xf32, #tpu.memory_space<vmem>>, %arg4: memref<1x1xf32, #tpu.memory_space<smem>>, %arg5: memref<2x8x128xf32, #tpu.memory_space<vmem>>) attributes {dimension_semantics = [#tpu.dimension_semantics<parallel>], iteration_bounds = array<i64: 1>, scalar_prefetch = 0 : i64, scratch_operands = 0 : i64, tpu.core_type = #tpu.core_type<tc>, window_params = [{transform_indices = @transform_0, window_bounds = array<i64: 2, 8, 128>}, {pipeline_mode = #tpu.pipeline_mode<synchronous>, transform_indices = @transform_1, window_bounds = array<i64: 128, 384>}, {pipeline_mode = #tpu.pipeline_mode<synchronous>, transform_indices = @transform_2, window_bounds = array<i64: 1, 384>}, {transform_indices = @transform_3, window_bounds = array<i64: 1, 1>}, {transform_indices = @transform_4, window_bounds = array<i64: 2, 8, 128>}]} {
    %c0 = arith.constant 0 : index
    %c0_0 = arith.constant 0 : index
    %c0_1 = arith.constant 0 : index
    %0 = vector.load %arg1[%c0, %c0_0, %c0_1] : memref<2x8x128xf32, #tpu.memory_space<vmem>>, vector<2x8x128xf32>
    %1 = vector.shape_cast %0 : vector<2x8x128xf32> to vector<16x128xf32>
    %2 = arith.truncf %1 : vector<16x128xf32> to vector<16x128xbf16>
    %c0_2 = arith.constant 0 : index
    %c0_3 = arith.constant 0 : index
    %3 = vector.load %arg2[%c0_2, %c0_3] : memref<128x384xbf16, #tpu.memory_space<vmem>>, vector<128x384xbf16>
    %cst = arith.constant dense<0.000000e+00> : vector<16x384xf32>
    %4 = tpu.matmul %2, %3, %cst {dimension_numbers = #tpu.dot_dimension_numbers<[1], [0], [0], [1], [0, 0, 1, 1], [], []>} : vector<16x128xbf16>, vector<128x384xbf16>, vector<16x384xf32> -> vector<16x384xf32>
    %c0_4 = arith.constant 0 : index
    %c0_5 = arith.constant 0 : index
    %5 = vector.load %arg3[%c0_4, %c0_5] : memref<1x384xf32, #tpu.memory_space<vmem>>, vector<1x384xf32>
    %6 = vector.broadcast %5 : vector<1x384xf32> to vector<16x384xf32>
    %7 = arith.addf %4, %6 : vector<16x384xf32>
    %8 = vector.extract_strided_slice %7 {offsets = [0, 0], sizes = [16, 128], strides = [1, 1]} : vector<16x384xf32> to vector<16x128xf32>
    %9 = vector.extract_strided_slice %7 {offsets = [0, 128], sizes = [16, 128], strides = [1, 1]} : vector<16x384xf32> to vector<16x128xf32>
    %10 = vector.extract_strided_slice %7 {offsets = [0, 256], sizes = [16, 128], strides = [1, 1]} : vector<16x384xf32> to vector<16x128xf32>
    %11 = math.tanh %8 : vector<16x128xf32>
    %12 = math.tanh %9 : vector<16x128xf32>
    %13 = vector.shape_cast %11 : vector<16x128xf32> to vector<2x8x128xf32>
    %14 = vector.shape_cast %12 : vector<16x128xf32> to vector<2x8x128xf32>
    %15 = vector.shape_cast %10 : vector<16x128xf32> to vector<2x8x128xf32>
    %16 = arith.truncf %13 : vector<2x8x128xf32> to vector<2x8x128xbf16>
    %17 = arith.truncf %14 : vector<2x8x128xf32> to vector<2x8x128xbf16>
    "tpu.trace_start"() <{level = 10 : i32, message = "bnd,bmd->bnm"}> : () -> ()
    %cst_6 = arith.constant dense<0.000000e+00> : vector<2x8x8xf32>
    %18 = tpu.matmul %16, %17, %cst_6 {dimension_numbers = #tpu.dot_dimension_numbers<[2], [2], [1], [1], [0, 0, 0, 1, 1, 1], [0], [0]>} : vector<2x8x128xbf16>, vector<2x8x128xbf16>, vector<2x8x8xf32> -> vector<2x8x8xf32>
    "tpu.trace_stop"() : () -> ()
    %cst_7 = arith.constant 1.250000e-01 : f32
    %19 = vector.broadcast %cst_7 : f32 to vector<2x8x8xf32>
    %20 = arith.mulf %18, %19 : vector<2x8x8xf32>
    %cst_8 = arith.constant dense<0xFF800000> : vector<2x8xf32>
    %21 = vector.multi_reduction <maximumf>, %20, %cst_8 [2] : vector<2x8x8xf32> to vector<2x8xf32>
    %22 = vector.shape_cast %21 : vector<2x8xf32> to vector<2x8x1xf32>
    %23 = vector.broadcast %22 : vector<2x8x1xf32> to vector<2x8x8xf32>
    %24 = arith.subf %20, %23 : vector<2x8x8xf32>
    %25 = math.exp %24 : vector<2x8x8xf32>
    %cst_9 = arith.constant dense<0.000000e+00> : vector<2x8xf32>
    %26 = vector.multi_reduction <add>, %25, %cst_9 [2] : vector<2x8x8xf32> to vector<2x8xf32>
    %27 = vector.shape_cast %26 : vector<2x8xf32> to vector<2x8x1xf32>
    %28 = tpu.reciprocal %27 {approx = true} : vector<2x8x1xf32> -> vector<2x8x1xf32>
    %29 = vector.broadcast %28 : vector<2x8x1xf32> to vector<2x8x8xf32>
    %30 = arith.mulf %25, %29 : vector<2x8x8xf32>
    %31 = vector.extract_strided_slice %30 {offsets = [0, 0, 0], sizes = [2, 8, 1], strides = [1, 1, 1]} : vector<2x8x8xf32> to vector<2x8x1xf32>
    %32 = vector.extract_strided_slice %15 {offsets = [0, 0, 0], sizes = [2, 1, 128], strides = [1, 1, 1]} : vector<2x8x128xf32> to vector<2x1x128xf32>
    %33 = vector.broadcast %31 : vector<2x8x1xf32> to vector<2x8x128xf32>
    %34 = vector.broadcast %32 : vector<2x1x128xf32> to vector<2x8x128xf32>
    %35 = arith.mulf %33, %34 : vector<2x8x128xf32>
    %36 = vector.extract_strided_slice %30 {offsets = [0, 0, 1], sizes = [2, 8, 1], strides = [1, 1, 1]} : vector<2x8x8xf32> to vector<2x8x1xf32>
    %37 = vector.extract_strided_slice %15 {offsets = [0, 1, 0], sizes = [2, 1, 128], strides = [1, 1, 1]} : vector<2x8x128xf32> to vector<2x1x128xf32>
    %38 = vector.broadcast %36 : vector<2x8x1xf32> to vector<2x8x128xf32>
    %39 = vector.broadcast %37 : vector<2x1x128xf32> to vector<2x8x128xf32>
    %40 = arith.mulf %38, %39 : vector<2x8x128xf32>
    %41 = arith.addf %35, %40 : vector<2x8x128xf32>
    %42 = vector.extract_strided_slice %30 {offsets = [0, 0, 2], sizes = [2, 8, 1], strides = [1, 1, 1]} : vector<2x8x8xf32> to vector<2x8x1xf32>
    %43 = vector.extract_strided_slice %15 {offsets = [0, 2, 0], sizes = [2, 1, 128], strides = [1, 1, 1]} : vector<2x8x128xf32> to vector<2x1x128xf32>
    %44 = vector.broadcast %42 : vector<2x8x1xf32> to vector<2x8x128xf32>
    %45 = vector.broadcast %43 : vector<2x1x128xf32> to vector<2x8x128xf32>
    %46 = arith.mulf %44, %45 : vector<2x8x128xf32>
    %47 = arith.addf %41, %46 : vector<2x8x128xf32>
    %48 = vector.extract_strided_slice %30 {offsets = [0, 0, 3], sizes = [2, 8, 1], strides = [1, 1, 1]} : vector<2x8x8xf32> to vector<2x8x1xf32>
    %49 = vector.extract_strided_slice %15 {offsets = [0, 3, 0], sizes = [2, 1, 128], strides = [1, 1, 1]} : vector<2x8x128xf32> to vector<2x1x128xf32>
    %50 = vector.broadcast %48 : vector<2x8x1xf32> to vector<2x8x128xf32>
    %51 = vector.broadcast %49 : vector<2x1x128xf32> to vector<2x8x128xf32>
    %52 = arith.mulf %50, %51 : vector<2x8x128xf32>
    %53 = arith.addf %47, %52 : vector<2x8x128xf32>
    %54 = vector.extract_strided_slice %30 {offsets = [0, 0, 4], sizes = [2, 8, 1], strides = [1, 1, 1]} : vector<2x8x8xf32> to vector<2x8x1xf32>
    %55 = vector.extract_strided_slice %15 {offsets = [0, 4, 0], sizes = [2, 1, 128], strides = [1, 1, 1]} : vector<2x8x128xf32> to vector<2x1x128xf32>
    %56 = vector.broadcast %54 : vector<2x8x1xf32> to vector<2x8x128xf32>
    %57 = vector.broadcast %55 : vector<2x1x128xf32> to vector<2x8x128xf32>
    %58 = arith.mulf %56, %57 : vector<2x8x128xf32>
    %59 = arith.addf %53, %58 : vector<2x8x128xf32>
    %60 = vector.extract_strided_slice %30 {offsets = [0, 0, 5], sizes = [2, 8, 1], strides = [1, 1, 1]} : vector<2x8x8xf32> to vector<2x8x1xf32>
    %61 = vector.extract_strided_slice %15 {offsets = [0, 5, 0], sizes = [2, 1, 128], strides = [1, 1, 1]} : vector<2x8x128xf32> to vector<2x1x128xf32>
    %62 = vector.broadcast %60 : vector<2x8x1xf32> to vector<2x8x128xf32>
    %63 = vector.broadcast %61 : vector<2x1x128xf32> to vector<2x8x128xf32>
    %64 = arith.mulf %62, %63 : vector<2x8x128xf32>
    %65 = arith.addf %59, %64 : vector<2x8x128xf32>
    %66 = vector.extract_strided_slice %30 {offsets = [0, 0, 6], sizes = [2, 8, 1], strides = [1, 1, 1]} : vector<2x8x8xf32> to vector<2x8x1xf32>
    %67 = vector.extract_strided_slice %15 {offsets = [0, 6, 0], sizes = [2, 1, 128], strides = [1, 1, 1]} : vector<2x8x128xf32> to vector<2x1x128xf32>
    %68 = vector.broadcast %66 : vector<2x8x1xf32> to vector<2x8x128xf32>
    %69 = vector.broadcast %67 : vector<2x1x128xf32> to vector<2x8x128xf32>
    %70 = arith.mulf %68, %69 : vector<2x8x128xf32>
    %71 = arith.addf %65, %70 : vector<2x8x128xf32>
    %72 = vector.extract_strided_slice %30 {offsets = [0, 0, 7], sizes = [2, 8, 1], strides = [1, 1, 1]} : vector<2x8x8xf32> to vector<2x8x1xf32>
    %73 = vector.extract_strided_slice %15 {offsets = [0, 7, 0], sizes = [2, 1, 128], strides = [1, 1, 1]} : vector<2x8x128xf32> to vector<2x1x128xf32>
    %74 = vector.broadcast %72 : vector<2x8x1xf32> to vector<2x8x128xf32>
    %75 = vector.broadcast %73 : vector<2x1x128xf32> to vector<2x8x128xf32>
    %76 = arith.mulf %74, %75 : vector<2x8x128xf32>
    %77 = arith.addf %71, %76 : vector<2x8x128xf32>
    %c0_10 = arith.constant 0 : index
    %c0_11 = arith.constant 0 : index
    %78 = memref.load %arg4[%c0_10, %c0_11] : memref<1x1xf32, #tpu.memory_space<smem>>
    %79 = vector.broadcast %78 : f32 to vector<2x8x128xf32>
    %80 = arith.mulf %79, %77 : vector<2x8x128xf32>
    %c0_12 = arith.constant 0 : index
    %c0_13 = arith.constant 0 : index
    %c0_14 = arith.constant 0 : index
    %81 = vector.load %arg1[%c0_12, %c0_13, %c0_14] : memref<2x8x128xf32, #tpu.memory_space<vmem>>, vector<2x8x128xf32>
    %82 = arith.addf %80, %81 : vector<2x8x128xf32>
    %c0_15 = arith.constant 0 : index
    %c0_16 = arith.constant 0 : index
    %c0_17 = arith.constant 0 : index
    %83 = vector.load %arg5[%c0_15, %c0_16, %c0_17] : memref<2x8x128xf32, #tpu.memory_space<vmem>>, vector<2x8x128xf32>
    tpu.vector_store %arg5[%c0_15, %c0_16, %c0_17], %82 {strides = array<i32>} : memref<2x8x128xf32, #tpu.memory_space<vmem>>, vector<2x8x128xf32>,
    return
  }
  func.func @transform_0(%arg0: i32) -> (i32, i32, i32) {
    %c0_i32 = arith.constant 0 : i32
    %c0_i32_0 = arith.constant 0 : i32
    %c0_i32_1 = arith.constant 0 : i32
    return %arg0, %c0_i32, %c0_i32_0 : i32, i32, i32
  }
  func.func @transform_1(%arg0: i32) -> (i32, i32) {
    %c0_i32 = arith.constant 0 : i32
    %c0_i32_0 = arith.constant 0 : i32
    %c0_i32_1 = arith.constant 0 : i32
    return %c0_i32, %c0_i32_0 : i32, i32
  }
  func.func @transform_2(%arg0: i32) -> (i32, i32) {
    %c0_i32 = arith.constant 0 : i32
    %c0_i32_0 = arith.constant 0 : i32
    %c0_i32_1 = arith.constant 0 : i32
    return %c0_i32, %c0_i32_0 : i32, i32
  }
  func.func @transform_3(%arg0: i32) -> (i32, i32) {
    %c0_i32 = arith.constant 0 : i32
    %c0_i32_0 = arith.constant 0 : i32
    %c0_i32_1 = arith.constant 0 : i32
    return %c0_i32, %c0_i32_0 : i32, i32
  }
  func.func @transform_4(%arg0: i32) -> (i32, i32, i32) {
    %c0_i32 = arith.constant 0 : i32
    %c0_i32_0 = arith.constant 0 : i32
    %c0_i32_1 = arith.constant 0 : i32
    return %arg0, %c0_i32, %c0_i32_0 : i32, i32, i32
  }
}

</mosaic_0001>

<bundles_post_ra>
// kernel: tpu_custom_call.1
= control target key start
LH: loop header
LB: loop body
LE: loop exit
PB: predicated region body
PF: predicated region fallthrough
CT: control target
= control target key end

     0   :  { %10 = vsyncpa [#allocation4], 0  ;;  %s951_s0 = inlined_call_operand.hbm [shape: f32[2,8,128], index: 0, kind: input, shape index: {}]   ;;  %s952_s1 = inlined_call_operand.hbm [shape: bf16[128,384], index: 1, kind: input, shape index: {}]   ;;  %s953_s2 = inlined_call_operand.vmem [shape: f32[1,384], index: 2, kind: input, shape index: {}]   ;;  %s954_s3 = inlined_call_operand.<no memory space> [shape: f32[1,1], index: 3, kind: input, shape index: {}]   ;;  %s955_s4 = inlined_call_operand.hbm [shape: f32[2,8,128], index: 4, kind: output, shape index: {}]  }
   0x1   :  { %11 = vsyncpa [#allocation7], 0 }
   0x2   :  { %12 = vsyncpa [#allocation5], 0  ;;  %s829_s15 = smov [#allocation3]  }
   0x3   :  { %s18_s16 = sshll.u32 %s829_s15, 4  ;;  %s19_s16 = int_to_ptr.vmem [resolvable:$true] %s18_s16 }
   0x4   :  { %s771_s17 = scalar_lea.vmem %s19_s16, 256  ;;  %p776_p1 = scmp.lt.s32.totalorder %s19_s16, %s19_s16 }
   0x5   :  { %p772_p0 = scmp.ne.s32.totalorder %s19_s16, %s771_s17  ;;  %p777_p2 = scmp.lt.s32.totalorder %s771_s17, %s771_s17 }
   0x7   :  { %p778_p3 = por %p777_p2, %p776_p1 }
   0x9   :  { %p779_p4 = pnand %p778_p3, %p772_p0 }
   0xb   :  { %782 = shalt.err (!%p779_p4)
}
   0xc   :  { %s830_s18 = smov 128   ;;  %s831_s19 = smov 8  }
   0xd   :  { %24 = dma.hbm_to_vmem [thread:$0]  %s951_s0, 256, %s19_s16, [#allocation4], %s830_s18, %s830_s18, %s831_s19  }
   0xe   :  { %s832_s22 = smov [#allocation6]  }
   0xf   :  { %s30_s23 = sshll.u32 %s832_s22, 4  ;;  %s31_s23 = int_to_ptr.vmem [resolvable:$true] %s30_s23 }
  0x10   :  { %s791_s24 = scalar_lea.vmem %s31_s23, 3072  ;;  %p796_p6 = scmp.lt.s32.totalorder %s31_s23, %s31_s23 }
  0x11   :  { %p792_p5 = scmp.ne.s32.totalorder %s31_s23, %s791_s24  ;;  %p797_p7 = scmp.lt.s32.totalorder %s791_s24, %s791_s24 }
  0x13   :  { %p798_p8 = por %p797_p7, %p796_p6 }
  0x15   :  { %p799_p9 = pnand %p798_p8, %p792_p5 }
  0x17   :  { %802 = shalt.err (!%p799_p9)
}
  0x18   :  { %s833_s25 = smov 192   ;;  %s834_s26 = smov 12  }
  0x19   :  { %36 = dma.hbm_to_vmem [thread:$0]  %s952_s1, 3072, %s31_s23, [#allocation7], %s833_s25, %s833_s25, %s834_s26  }
  0x1a   :  { %823 = dma.done.wait [#allocation4], 256  }
  0x1b   :  { %824 = vsyncadd [#allocation4], 4294967040 }
  0x1c   :  { %825 = dma.done.wait [#allocation7], 3072  }
  0x1d   :  { %826 = vsyncadd [#allocation7], 4294964224  ;;  %v835_v0 = vmov 0   ;;  %v836_v1 = vmov 0.0   ;;  %v715_v2 = vld [vmem:[#allocation6 + $0xac] ss:$12 sps:$4 sm:$0xff]   ;;  %v85_v29 = vlaneseq }
  0x1e   :  { %260 = vmatprep.mubr.bf16.mxu0 %v835_v0  ;;  %650 = vmatprep.subr.bf16.mxu1 %v836_v1  ;;  %v717_v3 = vld [vmem:[#allocation6 + $0xa8] ss:$12 sps:$4 sm:$0xff]   ;;  %v720_v5 = vld [vmem:[#allocation6 + $0x90] ss:$12 sps:$4 sm:$0xff]   ;;  %v723_v7 = vld [vmem:[#allocation6 + $0x78] ss:$12 sps:$4 sm:$0xff]  }
  0x1f   :  { %699 = vset.pattern.permute.xlu0 %v835_v0  ;;  %228 = vmatprep.subr.bf16.mxu0 %v715_v2  ;;  %v718_v4 = vld [vmem:[#allocation6 + $0x94] ss:$12 sps:$4 sm:$0xff]   ;;  %v721_v6 = vld [vmem:[#allocation6 + $0x7c] ss:$12 sps:$4 sm:$0xff]   ;;  %v724_v8 = vld [vmem:[#allocation6 + $0x64] ss:$12 sps:$4 sm:$0xff]  }
  0x20   :  { %229 = vmatpush1.bf16.msra.mxu0 %v717_v3  ;;  %v726_v9 = vld [vmem:[#allocation6 + $0x60] ss:$12 sps:$4 sm:$0xff]   ;;  %v739_v11 = vld [vmem:[#allocation6 + $0xb0] ss:$12 sps:$4 sm:$0xff]   ;;  %v729_v12 = vld [vmem:[#allocation6 + $0x48] ss:$12 sps:$4 sm:$0xff]  }
  0x21   :  { %230 = vmatprep.subr.bf16.mxu0 %v718_v4  ;;  %v727_v10 = vld [vmem:[#allocation6 + $0x4c] ss:$12 sps:$4 sm:$0xff]   ;;  %v730_v14 = vld [vmem:[#allocation6 + $0x34] ss:$12 sps:$4 sm:$0xff]   ;;  %651 = vmatpush3.bf16.msra.mxu1 %v739_v11  ;;  %v732_v15 = vld [vmem:[#allocation6 + $0x30] ss:$12 sps:$4 sm:$0xff]  }
  0x22   :  { %v740_v13 = vld [vmem:[#allocation6 + $0x98] ss:$12 sps:$4 sm:$0xff]   ;;  %652 = vmatprep.subr.bf16.mxu1 %v836_v1  ;;  %v733_v16 = vld [vmem:[#allocation6 + $0x1c] ss:$12 sps:$4 sm:$0xff]   ;;  %v738_v19 = vld [vmem:[#allocation6] ss:$12 sps:$4 sm:$0xff]  }
  0x23   :  { %v735_v17 = vld [vmem:[#allocation6 + $0x18] ss:$12 sps:$4 sm:$0xff]   ;;  %v885_v20 = vld [vmem:[#allocation3] sm:$0xff]  ;;  %v741_v23 = vld [vmem:[#allocation6 + $0x80] ss:$12 sps:$4 sm:$0xff]   ;;  %vm837_vm0 = vmmov 0  }
  0x24   :  { %231 = vmatpush1.bf16.msra.mxu0 %v720_v5  ;;  %v736_v18 = vld [vmem:[#allocation6 + $0x4] ss:$12 sps:$4 sm:$0xff]   ;;  %v887_v21 = vld [vmem:[#allocation3 + $0x8] sm:$0xff]  ;;  %v742_v24 = vld [vmem:[#allocation6 + $0x68] ss:$12 sps:$4 sm:$0xff]   ;;  %666 = vmatprep.mubr.msk.bf16.mxu1 %vm837_vm0, %v836_v1  ;;  %v901_v30 = vshrl.u32 %v85_v29, 7 }
  0x25   :  { %232 = vmatprep.subr.bf16.mxu0 %v721_v6  ;;  %653 = vmatpush3.bf16.msra.mxu1 %v740_v13  ;;  %v50_v22 = vpack.c.bf16 %v887_v21, %v885_v20  ;;  %v743_v25 = vld [vmem:[#allocation6 + $0x50] ss:$12 sps:$4 sm:$0xff]   ;;  %v744_v26 = vld [vmem:[#allocation6 + $0x38] ss:$12 sps:$4 sm:$0xff]   ;;  %v745_v27 = vld [vmem:[#allocation6 + $0x20] ss:$12 sps:$4 sm:$0xff]  }
  0x26   :  { %654 = vmatprep.subr.bf16.mxu1 %v836_v1  ;;  %v746_v28 = vld [vmem:[#allocation6 + $0x8] ss:$12 sps:$4 sm:$0xff]   ;;  %v904_v31 = vsub.s32 1, %v901_v30  ;;  %v909_v32 = vld [vmem:[%s953_s2] sm:$0x7]  ;;  %v912_v33 = vsub.s32 0, %v901_v30 }
  0x27   :  { %vm402_vm1 = vcmask 64512   ;;  %v844_v29 = vmov 5   ;;  %s845_s30 = smov [#allocation8]  }
  0x28   :  { %233 = vmatpush1.bf16.msra.mxu0 %v723_v7  ;;  %v92_v34 = vrot.slane %v909_v32, %v904_v31  ;;  %v88_v36 = vrot.slane %v909_v32, %v912_v33  ;;  %s600_s5 = sshll.u32 %s845_s30, 4  ;;  %s601_s5 = int_to_ptr.vmem [resolvable:$true] %s600_s5 }
  0x29   :  { %234 = vmatprep.subr.bf16.mxu0 %v724_v8  ;;  %655 = vmatpush3.bf16.msra.mxu1 %v741_v23  ;;  %v840_v23 = vmov 2   ;;  %s803_s6 = scalar_lea.vmem %s601_s5, 256  ;;  %p808_p11 = scmp.lt.s32.totalorder %s601_s5, %s601_s5 }
  0x2a   :  { %656 = vmatprep.subr.bf16.mxu1 %v836_v1  ;;  %p804_p10 = scmp.ne.s32.totalorder %s601_s5, %s803_s6  ;;  %p809_p12 = scmp.lt.s32.totalorder %s803_s6, %s803_s6 }
  0x2c   :  { %235 = vmatpush1.bf16.msra.mxu0 %v726_v9  ;;  %p810_p13 = por %p809_p12, %p808_p11 }
  0x2d   :  { %236 = vmatprep.subr.bf16.mxu0 %v727_v10  ;;  %657 = vmatpush3.bf16.msra.mxu1 %v742_v24 }
  0x2e   :  { %658 = vmatprep.subr.bf16.mxu1 %v836_v1  ;;  %p811_p0 = pnand %p810_p13, %p804_p10 }
  0x30   :  { %237 = vmatpush1.bf16.msra.mxu0 %v729_v12 }
  0x31   :  { %238 = vmatprep.subr.bf16.mxu0 %v730_v14  ;;  %659 = vmatpush3.bf16.msra.mxu1 %v743_v25 }
  0x32   :  { %660 = vmatprep.subr.bf16.mxu1 %v836_v1 }
  0x34   :  { %239 = vmatpush1.bf16.msra.mxu0 %v732_v15  ;;  %v838_v15 = vmov 1  }
  0x35   :  { %240 = vmatprep.subr.bf16.mxu0 %v733_v16  ;;  %661 = vmatpush3.bf16.msra.mxu1 %v744_v26  ;;  %v841_v26 = vmov 4  }
  0x36   :  { %662 = vmatprep.subr.bf16.mxu1 %v836_v1  ;;  %700 = vset.pattern.permute.xlu1 %v838_v15 }
  0x38   :  { %241 = vmatpush1.bf16.msra.mxu0 %v735_v17 }
  0x39   :  { %242 = vmatprep.subr.bf16.mxu0 %v736_v18  ;;  %663 = vmatpush3.bf16.msra.mxu1 %v745_v27  ;;  %v842_v27 = vmov 3  }
  0x3a   :  { %664 = vmatprep.subr.bf16.mxu1 %v836_v1 }
  0x3c   :  { %243 = vmatpush1.bf16.msra.mxu0 %v738_v19 }
  0x3d   :  { %670 = vmatprep.subr.bf16.mxu0 %v836_v1  ;;  %665 = vmatpush3.bf16.msra.mxu1 %v746_v28  ;;  %v843_v28 = vmov 7  }
  0x3e   :  { %676 = vmatprep.subr.bf16.mxu1 %v836_v1 }
  0x3f   :  { %261 = vmatmul.mubr.bf16.vlgmr.msra.gmra.mxu0 %v50_v22 }
  0x40   :  { %672 = vmatprep.mubr.msk.bf16.mxu0 %vm837_vm0, %v836_v1  ;;  %667 = vmatmul.mubr.bf16.vlgmr.msra.gmra.mxu1 %v50_v22  ;;  %v839_v22 = vmov 6  }
  0x41   :  { %678 = vmatprep.mubr.msk.bf16.mxu1 %vm837_vm0, %v836_v1 }
  0xff   :  { %v262_v35 = vpop.f32.mrf.mxu0 }
 0x100   :  { %v263_v40 = vadd.f32 %v262_v35, %v88_v36  ;;  %v918_v52 = vpop.f32.mrf.mxu1 }
 0x101   :  { %v264_v37 = vpop.f32.mrf.mxu0 }
 0x102   :  { %v265_v38 = vadd.f32 %v264_v37, %v92_v34  ;;  %v668_v53 = vpop.f32.mrf.mxu1 }
 0x103   :  { %v266_v39 = vpop.f32.mrf.mxu0 }
 0x104   :  { %747 = vtanh.f32 %v265_v38  ;;  %v267_v43 = vadd.f32 %v266_v39, %v88_v36  ;;  %v920_v54 = vpop.f32.mrf.mxu1 }
 0x105   :  { %v268_v41 = vpop.f32.mrf.mxu0 }
 0x106   :  { %v269_v42 = vadd.f32 %v268_v41, %v92_v34  ;;  %v669_v55 = vpop.f32.mrf.mxu1 }
 0x108   :  { %749 = vtanh.f32 %v269_v42 }
 0x109   :  { %751 = vtanh.f32 %v263_v40 }
 0x10a   :  { %753 = vtanh.f32 %v267_v43 }
 0x111   :  { %v748_v44 = vpop.eup %747 }
 0x112   :  { %v318_v45 = vpack.c.bf16 %v748_v44, %v748_v44 }
 0x114   :  { %671 = vmatpush3.bf16.xpose.msra.mxu0 %v318_v45 }
 0x115   :  { %v750_v46 = vpop.eup %749 }
 0x116   :  { %v752_v47 = vpop.eup %751  ;;  %v319_v48 = vpack.c.bf16 %v750_v46, %v750_v46  ;;  %v495_v46 = vsub.s32 3, %v901_v30 }
 0x117   :  { %v316_v49 = vpack.c.bf16 %v752_v47, %v752_v47  ;;  %v754_v50 = vpop.eup %753 }
 0x118   :  { %677 = vmatpush3.bf16.xpose.msra.mxu1 %v319_v48  ;;  %v317_v51 = vpack.c.bf16 %v754_v50, %v754_v50 }
 0x11b   :  { %673 = vmatmul.mubr.bf16.vlgmr.msra.gmra.mxu0 %v316_v49 }
 0x11f   :  { %679 = vmatmul.mubr.bf16.vlgmr.msra.gmra.mxu1 %v317_v51 }
 0x1db   :  { %v354_v56 = vpop.f32.mrf.mxu0 }
 0x1dc   :  { %v400_v57 = vmul.f32 0.125, %v354_v56  ;;  %v515_v56 = vsub.s32 4, %v901_v30 }
 0x1dd   :  { %v674_v58 = vpop.f32.mrf.mxu0 }
 0x1de   :  { %v403_v59 = vsel %vm402_vm1, %v400_v57, -inf }
 0x1df   :  { %v394_v60 = vpop.f32.mrf.mxu1  ;;  %404 = vmax.xlane.f32.xlu0 %v403_v59  ;;  %v357_v61 = vpop.f32.mrf.mxu0 }
 0x1e0   :  { %v401_v62 = vmul.f32 0.125, %v394_v60 }
 0x1e1   :  { %v675_v63 = vpop.f32.mrf.mxu0  ;;  %v680_v1 = vpop.f32.mrf.mxu1 }
 0x1e2   :  { %v406_v2 = vsel %vm402_vm1, %v401_v62, -inf }
 0x1e3   :  { %v397_v3 = vpop.f32.mrf.mxu1  ;;  %407 = vmax.xlane.f32.xlu0 %v406_v2 }
 0x1e5   :  { %v681_v4 = vpop.f32.mrf.mxu1 }
 0x268   :  { %v405_v5 = vpop.xlane.xlu0 %404 }
 0x269   :  { %v409_v6 = vsub.f32 %v400_v57, %v405_v5 }
 0x26b   :  { %v411_v7 = vmul.f32 1.442695, %v409_v6 }
 0x26c   :  { %v408_v8 = vpop.xlane.xlu0 %407 }
 0x26d   :  { %755 = vpow2.f32 %v411_v7  ;;  %v410_v9 = vsub.f32 %v401_v62, %v408_v8  ;;  %v535_v62 = vsub.s32 5, %v901_v30  ;;  %v555_v8 = vsub.s32 6, %v901_v30 }
 0x26f   :  { %v413_v10 = vmul.f32 1.442695, %v410_v9 }
 0x271   :  { %757 = vpow2.f32 %v413_v10 }
 0x27a   :  { %v756_v11 = vpop.eup %755 }
 0x27b   :  { %v415_v12 = vsel %vm402_vm1, %v756_v11, 0.0 }
 0x27c   :  { %416 = vadd.xlane.f32.xlu1 %v415_v12 }
 0x27e   :  { %v758_v13 = vpop.eup %757 }
 0x27f   :  { %v418_v14 = vsel %vm402_vm1, %v758_v13, 0.0 }
 0x280   :  { %419 = vadd.xlane.f32.xlu1 %v418_v14 }
 0x305   :  { %v417_v16 = vpop.xlane.xlu1 %416 }
 0x306   :  { %759 = vrcp.f32 %v417_v16 }
 0x309   :  { %v420_v17 = vpop.xlane.xlu1 %419 }
 0x30a   :  { %761 = vrcp.f32 %v420_v17 }
 0x313   :  { %v760_v18 = vpop.eup %759 }
 0x314   :  { %v423_v19 = vmul.f32 %v760_v18, %v756_v11 }
 0x316   :  { %427 = vperm.xlu0 %699, %v423_v19   ;;  %446 = vperm.xlu1 %700, %v423_v19  }
 0x317   :  { %v762_v24 = vpop.eup %761 }
 0x318   :  { %v424_v25 = vmul.f32 %v762_v24, %v758_v13 }
 0x31a   :  { %705 = vset.pattern.permute.xlu0 %v839_v22  ;;  %701 = vset.pattern.permute.xlu1 %v840_v23 }
 0x31b   :  { %546 = vperm.xlu0 %705, %v423_v19   ;;  %466 = vperm.xlu1 %701, %v423_v19  }
 0x31f   :  { %710 = vset.pattern.permute.xlu0 %v841_v26  ;;  %702 = vset.pattern.permute.xlu1 %v842_v27 }
 0x320   :  { %486 = vperm.xlu1 %702, %v423_v19   ;;  %510 = vperm.xlu0 %710, %v424_v25  }
 0x324   :  { %703 = vset.pattern.permute.xlu1 %v841_v26  ;;  %714 = vset.pattern.permute.xlu0 %v843_v28 }
 0x325   :  { %506 = vperm.xlu1 %703, %v423_v19   ;;  %570 = vperm.xlu0 %714, %v424_v25  }
 0x329   :  { %704 = vset.pattern.permute.xlu1 %v844_v29 }
 0x32a   :  { %526 = vperm.xlu1 %704, %v423_v19  }
 0x32e   :  { %706 = vset.pattern.permute.xlu1 %v835_v0  ;;  %v95_v0 = vsub.s32 2, %v901_v30 }
 0x32f   :  { %432 = vperm.xlu1 %706, %v424_v25  }
 0x330   :  { %v96_v39 = vrot.slane %v909_v32, %v95_v0 }
 0x332   :  { %v309_v41 = vadd.f32 %v920_v54, %v96_v39  ;;  %v306_v45 = vadd.f32 %v918_v52, %v96_v39 }
 0x333   :  { %707 = vset.pattern.permute.xlu1 %v838_v15  ;;  %v575_v15 = vsub.s32 7, %v901_v30  ;;  %v586_v30 = vstv %s954_s3 }
 0x334   :  { %450 = vperm.xlu1 %707, %v424_v25   ;;  %v460_v44 = vrot.slane %v309_v41, %v904_v31  ;;  %v442_v47 = vrot.slane %v309_v41, %v912_v33  ;;  %v480_v49 = vrot.slane %v309_v41, %v95_v0  ;;  %v456_v32 = vrot.slane %v306_v45, %v904_v31 }
 0x335   :  { %v438_v54 = vrot.slane %v306_v45, %v912_v33  ;;  %v500_v58 = vrot.slane %v309_v41, %v495_v46  ;;  %v476_v60 = vrot.slane %v306_v45, %v95_v0  ;;  %v496_v3 = vrot.slane %v306_v45, %v495_v46 }
 0x336   :  { %v520_v5 = vrot.slane %v309_v41, %v515_v56  ;;  %v516_v33 = vrot.slane %v306_v45, %v515_v56  ;;  %v540_v10 = vrot.slane %v309_v41, %v535_v62  ;;  %v536_v14 = vrot.slane %v306_v45, %v535_v62 }
 0x337   :  { %v580_v26 = vrot.slane %v309_v41, %v575_v15 }
 0x338   :  { %708 = vset.pattern.permute.xlu1 %v840_v23 }
 0x339   :  { %470 = vperm.xlu1 %708, %v424_v25  }
 0x33d   :  { %709 = vset.pattern.permute.xlu1 %v842_v27 }
 0x33e   :  { %490 = vperm.xlu1 %709, %v424_v25  }
 0x342   :  { %711 = vset.pattern.permute.xlu1 %v844_v29  ;;  %v556_v29 = vrot.slane %v306_v45, %v555_v8 }
 0x343   :  { %530 = vperm.xlu1 %711, %v424_v25  }
 0x347   :  { %712 = vset.pattern.permute.xlu1 %v839_v22  ;;  %v560_v22 = vrot.slane %v309_v41, %v555_v8 }
 0x348   :  { %550 = vperm.xlu1 %712, %v424_v25  }
 0x34c   :  { %713 = vset.pattern.permute.xlu1 %v843_v28 }
 0x34d   :  { %566 = vperm.xlu1 %713, %v423_v19  }
 0x391   :  { %v447_v34 = vpop.permute.xlu1 %446  ;;  %v428_v42 = vpop.permute.xlu0 %427 }
 0x392   :  { %v461_v59 = vmul.f32 %v456_v32, %v447_v34  ;;  %v443_v52 = vmul.f32 %v438_v54, %v428_v42 }
 0x394   :  { %v463_v31 = vadd.f32 %v461_v59, %v443_v52 }
 0x396   :  { %v467_v35 = vpop.permute.xlu1 %466  ;;  %v547_v51 = vpop.permute.xlu0 %546 }
 0x397   :  { %v481_v2 = vmul.f32 %v476_v60, %v467_v35  ;;  %v561_v0 = vmul.f32 %v556_v29, %v547_v51 }
 0x399   :  { %v483_v12 = vadd.f32 %v481_v2, %v463_v31 }
 0x39b   :  { %v487_v36 = vpop.permute.xlu1 %486  ;;  %v511_v4 = vpop.permute.xlu0 %510 }
 0x39c   :  { %v501_v7 = vmul.f32 %v496_v3, %v487_v36  ;;  %v522_v9 = vmul.f32 %v520_v5, %v511_v4 }
 0x39e   :  { %v503_v18 = vadd.f32 %v501_v7, %v483_v12 }
 0x3a0   :  { %v507_v37 = vpop.permute.xlu1 %506  ;;  %v571_v24 = vpop.permute.xlu0 %570 }
 0x3a1   :  { %v521_v13 = vmul.f32 %v516_v33, %v507_v37  ;;  %v582_v35 = vmul.f32 %v580_v26, %v571_v24  ;;  %v576_v37 = vrot.slane %v306_v45, %v575_v15 }
 0x3a3   :  { %v523_v23 = vadd.f32 %v521_v13, %v503_v18 }
 0x3a5   :  { %v527_v38 = vpop.permute.xlu1 %526 }
 0x3a6   :  { %v541_v19 = vmul.f32 %v536_v14, %v527_v38 }
 0x3a8   :  { %v543_v34 = vadd.f32 %v541_v19, %v523_v23 }
 0x3aa   :  { %v433_v40 = vpop.permute.xlu1 %432  ;;  %v563_v38 = vadd.f32 %v561_v0, %v543_v34 }
 0x3ab   :  { %v444_v53 = vmul.f32 %v442_v47, %v433_v40 }
 0x3af   :  { %v451_v43 = vpop.permute.xlu1 %450 }
 0x3b0   :  { %v462_v48 = vmul.f32 %v460_v44, %v451_v43 }
 0x3b2   :  { %v464_v57 = vadd.f32 %v462_v48, %v444_v53 }
 0x3b4   :  { %v471_v50 = vpop.permute.xlu1 %470 }
 0x3b5   :  { %v482_v55 = vmul.f32 %v480_v49, %v471_v50 }
 0x3b7   :  { %v484_v63 = vadd.f32 %v482_v55, %v464_v57 }
 0x3b9   :  { %v491_v61 = vpop.permute.xlu1 %490 }
 0x3ba   :  { %v502_v1 = vmul.f32 %v500_v58, %v491_v61 }
 0x3bc   :  { %v504_v6 = vadd.f32 %v502_v1, %v484_v63 }
 0x3be   :  { %v531_v11 = vpop.permute.xlu1 %530  ;;  %v524_v16 = vadd.f32 %v522_v9, %v504_v6 }
 0x3bf   :  { %v542_v17 = vmul.f32 %v540_v10, %v531_v11 }
 0x3c1   :  { %v544_v27 = vadd.f32 %v542_v17, %v524_v16 }
 0x3c3   :  { %v551_v25 = vpop.permute.xlu1 %550 }
 0x3c4   :  { %v562_v28 = vmul.f32 %v560_v22, %v551_v25 }
 0x3c6   :  { %v564_v36 = vadd.f32 %v562_v28, %v544_v27 }
 0x3c8   :  { %v584_v39 = vadd.f32 %v582_v35, %v564_v36  ;;  %v567_v40 = vpop.permute.xlu1 %566 }
 0x3c9   :  { %v581_v42 = vmul.f32 %v576_v37, %v567_v40 }
 0x3ca   :  { %v588_v43 = vmul.f32 %v586_v30, %v584_v39 }
 0x3cb   :  { %v583_v44 = vadd.f32 %v581_v42, %v563_v38 }
 0x3cc   :  { %v592_v41 = vadd.f32 %v588_v43, %v887_v21 }
 0x3cd   :  { %v587_v46 = vmul.f32 %v586_v30, %v583_v44 }
 0x3ce   :  { %594 = vst [vmem:[#allocation8 + $0x8] sm:$0xff] %v592_v41 }
 0x3cf   :  { %v591_v47 = vadd.f32 %v587_v46, %v885_v20 }
 0x3d1   :  { %593 = vst [vmem:[#allocation8] sm:$0xff] %v591_v47 }
 0x3d2   :  { %814 = shalt.err (!%p811_p0)
}
 0x3d3   :  { %606 = dma.vmem_to_hbm [thread:$0]  %s601_s5, 256, %s955_s4, [#allocation5], %s830_s18, %s830_s18, %s831_s19  }
 0x3d4   :  { %827 = dma.done.wait [#allocation5], 256  }
 0x3d5   :  { %828 = vsyncadd [#allocation5], 4294967040 }
 0x3d6   :  { %610 = vsyncpa [#allocation4], 1 }
 0x3d7   :  { %611 = vsyncpa [#allocation7], 1 }
 0x3d8   :  { %612 = vsyncpa [#allocation5], 1 }

</bundles_post_ra>
